<compile_context>
chip_gen: v7x
topology: tpu7x:2x2x1
jax: 0.10.0
libtpu: 0.0.40
codegen_flags: <defaults>
</compile_context>

<pallas_src>
import jax
import jax.numpy as jnp
from jax.experimental import pallas as pl
from jax.experimental.pallas import tpu as pltpu


def _muladd_kernel(w_ref, b_ref, x_ref, o_ref):
    # w_ref, b_ref: SMEM float32 scalars of shape (1,)
    # x_ref, o_ref: VMEM tiles of shape (block_rows, lane_w)
    w = w_ref[0]
    b = b_ref[0]
    x = x_ref[...]
    o_ref[...] = (x.astype(jnp.float32) * w + b).astype(o_ref.dtype)


def _pick_lane_width(n):
    """Widest lane dimension (multiple of 128) that divides n, else None."""
    for w in (8192, 4096, 2048, 1024, 512, 256, 128):
        if n % w == 0:
            return w
    return None


def learnable_mul_add(x, weight, bias, *, target_block_bytes=2 * 1024 * 1024):
    """y = x * weight + bias, computed in a Pallas TPU kernel.

    weight / bias are 0-d (or size-1) arrays mirroring the PyTorch scalar
    parameters.  Works for any input shape/dtype; result keeps x's
    shape/dtype.
    """
    orig_shape = x.shape
    dtype = x.dtype
    n = x.size
    if n == 0:
        return x

    flat = x.reshape(-1)  # free for contiguous inputs

    lane_w = _pick_lane_width(n)
    padded = False
    if lane_w is None:
        # Rare case: element count not a multiple of 128.  Pad the flat vector
        # (one extra copy) up to a lane-dense width.
        lane_w = 1024
        n_pad = ((n + lane_w - 1) // lane_w) * lane_w
        flat = jnp.pad(flat, (0, n_pad - n))
        padded = True
    else:
        n_pad = n

    rows = n_pad // lane_w
    x2 = flat.reshape(rows, lane_w)

    # ~2 MiB blocks: amortize per-step overhead, stay under the default
    # scoped-VMEM limit with double-buffered input+output (4x block bytes).
    elem_bytes = jnp.dtype(dtype).itemsize
    br = max(8, (target_block_bytes // (lane_w * elem_bytes)) // 8 * 8)
    if br >= rows:
        block_rows = rows          # full-extent block: allowed for any rows
        grid = (1,)
    else:
        block_rows = br            # multiple of 8; ragged last block is masked
        grid = (pl.cdiv(rows, block_rows),)

    # Scalars as float32 in SMEM (safe lowering for sub-32-bit input dtypes);
    # single cast back to the output dtype happens in-kernel.
    w_smem = jnp.asarray(weight, dtype=jnp.float32).reshape(1)
    b_smem = jnp.asarray(bias, dtype=jnp.float32).reshape(1)

    out2 = pl.pallas_call(
        _muladd_kernel,
        out_shape=jax.ShapeDtypeStruct((rows, lane_w), dtype),
        grid_spec=pl.GridSpec(
            grid=grid,
            in_specs=[
                pl.BlockSpec(memory_space=pltpu.MemorySpace.SMEM),     # weight
                pl.BlockSpec(memory_space=pltpu.MemorySpace.SMEM),     # bias
                pl.BlockSpec((block_rows, lane_w), lambda i: (i, 0)),  # x tile
            ],
            out_specs=pl.BlockSpec((block_rows, lane_w), lambda i: (i, 0)),
        ),
        compiler_params=pltpu.CompilerParams(
            dimension_semantics=("parallel",)   # lets v7x shard grid over 2 TCs
        ),
    )(w_smem, b_smem, x2)

    out_flat = out2.reshape(-1)
    if padded:
        out_flat = out_flat[:n]
    return out_flat.reshape(orig_shape)


class LearnableMulAddPallas:
    """Mirror of torchzero LearnableMulAdd: scalar weight & bias parameters."""

    def __init__(self, init_w=1.0, init_b=0.0, dtype=jnp.float32):
        # Deterministic init, exactly like the PyTorch module's __init__.
        self.weight = jnp.asarray(init_w, dtype=dtype)   # scalar parameter
        self.bias = jnp.asarray(init_b, dtype=dtype)     # scalar parameter

    def __call__(self, x):
        return learnable_mul_add(x, self.weight, self.bias)


if __name__ == "__main__":
    key = jax.random.PRNGKey(0)

    # NCHW input, same convention as the PyTorch module would typically see.
    x = jax.random.normal(key, (2, 4, 16, 16), dtype=jnp.float32)

    # Non-trivial init so the kernel's effect is visible.
    module = LearnableMulAddPallas(init_w=1.5, init_b=0.25)

    y = jax.block_until_ready(module(x))
    y_ref = x * module.weight + module.bias
    assert y.shape == x.shape and y.dtype == x.dtype
    assert jnp.allclose(y, y_ref, atol=1e-6, rtol=1e-6)

    # Also exercise the ragged (size not a multiple of 128) fallback path.
    x_odd = jax.random.normal(jax.random.PRNGKey(1), (3, 5, 7), dtype=jnp.float32)
    y_odd = jax.block_until_ready(module(x_odd))
    y_odd_ref = x_odd * module.weight + module.bias
    assert y_odd.shape == x_odd.shape and y_odd.dtype == x_odd.dtype
    assert jnp.allclose(y_odd, y_odd_ref, atol=1e-6, rtol=1e-6)

    print("KERNEL_OK")
</pallas_src>

<mosaic_0001>
module attributes {stable_mosaic.version = 11 : i64} {
  func.func @_muladd_kernel(%arg0: i32, %arg1: memref<1xf32, #tpu.memory_space<smem>>, %arg2: memref<1xf32, #tpu.memory_space<smem>>, %arg3: memref<1x2048xf32, #tpu.memory_space<vmem>>, %arg4: memref<1x2048xf32, #tpu.memory_space<vmem>>) attributes {dimension_semantics = [#tpu.dimension_semantics<parallel>], iteration_bounds = array<i64: 1>, scalar_prefetch = 0 : i64, scratch_operands = 0 : i64, tpu.core_type = #tpu.core_type<tc>, window_params = [{transform_indices = @transform_0, window_bounds = array<i64: 1>}, {transform_indices = @transform_1, window_bounds = array<i64: 1>}, {transform_indices = @transform_2, window_bounds = array<i64: 1, 2048>}, {transform_indices = @transform_3, window_bounds = array<i64: 1, 2048>}]} {
    %c0 = arith.constant 0 : index
    %0 = memref.load %arg1[%c0] : memref<1xf32, #tpu.memory_space<smem>>
    %c0_0 = arith.constant 0 : index
    %1 = memref.load %arg2[%c0_0] : memref<1xf32, #tpu.memory_space<smem>>
    %c0_1 = arith.constant 0 : index
    %c0_2 = arith.constant 0 : index
    %2 = vector.load %arg3[%c0_1, %c0_2] : memref<1x2048xf32, #tpu.memory_space<vmem>>, vector<1x2048xf32>
    %3 = vector.broadcast %0 : f32 to vector<1x2048xf32>
    %4 = arith.mulf %2, %3 : vector<1x2048xf32>
    %5 = vector.broadcast %1 : f32 to vector<1x2048xf32>
    %6 = arith.addf %4, %5 : vector<1x2048xf32>
    %c0_3 = arith.constant 0 : index
    %c0_4 = arith.constant 0 : index
    %7 = vector.load %arg4[%c0_3, %c0_4] : memref<1x2048xf32, #tpu.memory_space<vmem>>, vector<1x2048xf32>
    tpu.vector_store %arg4[%c0_3, %c0_4], %6 {strides = array<i32>} : memref<1x2048xf32, #tpu.memory_space<vmem>>, vector<1x2048xf32>,
    return
  }
  func.func @transform_0(%arg0: i32) -> i32 {
    %c0_i32 = arith.constant 0 : i32
    %c0_i32_0 = arith.constant 0 : i32
    return %c0_i32 : i32
  }
  func.func @transform_1(%arg0: i32) -> i32 {
    %c0_i32 = arith.constant 0 : i32
    %c0_i32_0 = arith.constant 0 : i32
    return %c0_i32 : i32
  }
  func.func @transform_2(%arg0: i32) -> (i32, i32) {
    %c0_i32 = arith.constant 0 : i32
    %c0_i32_0 = arith.constant 0 : i32
    return %arg0, %c0_i32 : i32, i32
  }
  func.func @transform_3(%arg0: i32) -> (i32, i32) {
    %c0_i32 = arith.constant 0 : i32
    %c0_i32_0 = arith.constant 0 : i32
    return %arg0, %c0_i32 : i32, i32
  }
}

</mosaic_0001>

<bundles_post_ra>
// kernel: tpu_custom_call.1
= control target key start
LH: loop header
LB: loop body
LE: loop exit
PB: predicated region body
PF: predicated region fallthrough
CT: control target
= control target key end

     0   :  { %10 = vsyncpa [#allocation5], 0  ;;  %s158_s0 = inlined_call_operand.<no memory space> [shape: f32[1], index: 0, kind: input, shape index: {}]   ;;  %s159_s1 = inlined_call_operand.<no memory space> [shape: f32[1], index: 1, kind: input, shape index: {}]   ;;  %s160_s2 = inlined_call_operand.hbm [shape: f32[1,2048], index: 2, kind: input, shape index: {}]   ;;  %s161_s3 = inlined_call_operand.hbm [shape: f32[1,2048], index: 3, kind: output, shape index: {}]  }
   0x1   :  { %11 = vsyncpa [#allocation6], 0  ;;  %s106_s12 = smov [#allocation4]   ;;  %s58_s16 = scalar_lea.hbm %s160_s2, 256 }
   0x2   :  { %s22_s13 = sshll.u32 %s106_s12, 4  ;;  %p59_p0 = scmp.ne.s32.totalorder %s160_s2, %s58_s16  ;;  %s23_s13 = int_to_ptr.vmem [resolvable:$true] %s22_s13 }
   0x3   :  { %p62_p1 = scmp.lt.u32.totalorder %s58_s16, %s160_s2 }
   0x5   :  { %p64_p2 = pnand %p62_p1, %p59_p0 }
   0x7   :  { %67 = shalt.err (!%p64_p2)
}
   0x8   :  { %s68_s21 = scalar_lea.vmem %s23_s13, 256  ;;  %p73_p4 = scmp.lt.s32.totalorder %s23_s13, %s23_s13 }
   0x9   :  { %p69_p3 = scmp.ne.s32.totalorder %s23_s13, %s68_s21  ;;  %p74_p5 = scmp.lt.s32.totalorder %s68_s21, %s68_s21 }
   0xb   :  { %p75_p6 = por %p74_p5, %p73_p4 }
   0xd   :  { %p76_p7 = pnand %p75_p6, %p69_p3 }
   0xf   :  { %79 = shalt.err (!%p76_p7)
}
  0x10   :  { %25 = dma.hbm_to_vmem [thread:$0]  %s160_s2, 256, %s23_s13, [#allocation5]  }
  0x11   :  { %102 = dma.done.wait [#allocation5], 256  }
  0x12   :  { %103 = vsyncadd [#allocation5], 4294967040  ;;  %v33_v0 = vstv %s158_s0  ;;  %v31_v1 = vld [vmem:[#allocation4] sm:$0xff]  ;;  %v36_v2 = vstv %s159_s1  ;;  %v32_v3 = vld [vmem:[#allocation4 + $0x8] sm:$0xff]  ;;  %s107_s28 = smov [#allocation7]  }
  0x13   :  { %s47_s29 = sshll.u32 %s107_s28, 4  ;;  %v34_v4 = vmul.f32 %v33_v0, %v31_v1  ;;  %v35_v5 = vmul.f32 %v33_v0, %v32_v3  ;;  %s48_s29 = int_to_ptr.vmem [resolvable:$true] %s47_s29 }
  0x14   :  { %s80_s2 = scalar_lea.vmem %s48_s29, 256  ;;  %p85_p9 = scmp.lt.s32.totalorder %s48_s29, %s48_s29 }
  0x15   :  { %v37_v6 = vadd.f32 %v36_v2, %v34_v4  ;;  %v38_v7 = vadd.f32 %v36_v2, %v35_v5  ;;  %p81_p8 = scmp.ne.s32.totalorder %s48_s29, %s80_s2  ;;  %p86_p10 = scmp.lt.s32.totalorder %s80_s2, %s80_s2 }
  0x17   :  { %39 = vst [vmem:[#allocation7] sm:$0xff] %v37_v6  ;;  %40 = vst [vmem:[#allocation7 + $0x8] sm:$0xff] %v38_v7  ;;  %p87_p11 = por %p86_p10, %p85_p9 }
  0x19   :  { %p88_p12 = pnand %p87_p11, %p81_p8 }
  0x1b   :  { %91 = shalt.err (!%p88_p12)
}
  0x1c   :  { %s92_s1 = scalar_lea.hbm %s161_s3, 256 }
  0x1d   :  { %p93_p13 = scmp.ne.s32.totalorder %s161_s3, %s92_s1  ;;  %p96_p0 = scmp.lt.u32.totalorder %s92_s1, %s161_s3 }
  0x1f   :  { %p98_p1 = pnand %p96_p0, %p93_p13 }
  0x21   :  { %101 = shalt.err (!%p98_p1)
}
  0x22   :  { %50 = dma.vmem_to_hbm [thread:$0]  %s48_s29, 256, %s161_s3, [#allocation6]  }
  0x23   :  { %104 = dma.done.wait [#allocation6], 256  }
  0x24   :  { %105 = vsyncadd [#allocation6], 4294967040 }
  0x25   :  { %54 = vsyncpa [#allocation5], 1 }
  0x26   :  { %55 = vsyncpa [#allocation6], 1 }

</bundles_post_ra>
